<compile_context>
chip_gen: v6e
topology: v6e:2x2x1
jax: 0.10.0
libtpu: 0.0.40
codegen_flags: <defaults>
</compile_context>

<pallas_src>
import functools

import jax
import jax.numpy as jnp
from jax.experimental import pallas as pl
from jax.experimental.pallas import tpu as pltpu

IN_FEATURES = 300


def _bow_kernel(x_ref, t_ref,
                w1_ref, b1_ref,
                w2_ref, b2_ref,
                wo_ref, bo_ref,
                logits_ref, perex_ref):
    # ---- layer 1: fused fc1+bn1 -> relu  (bf16 MXU matmul, f32 accumulate) --
    h = jnp.dot(x_ref[...], w1_ref[...], preferred_element_type=jnp.float32)
    h = jnp.maximum(h + b1_ref[...], 0.0)                       # (TB, H) f32

    # ---- layer 2: fused fc2+bn2 -> relu -------------------------------------
    h = jnp.dot(h.astype(jnp.bfloat16), w2_ref[...],
                preferred_element_type=jnp.float32)
    h = jnp.maximum(h + b2_ref[...], 0.0)                       # (TB, H) f32

    # ---- output head: N=1 linear as VPU multiply + lane reduce (no MXU) -----
    z = jnp.sum(h * wo_ref[...], axis=-1, keepdims=True) + bo_ref[...]  # (TB,1)
    logits_ref[...] = z

    # ---- per-example BCE-with-logits (stable form) ---------------------------
    # The mean over the *true* batch is taken in the wrapper so the batch grid
    # axis stays fully "parallel" (no cross-block accumulator needed).
    t = t_ref[...]                                              # (TB, 1)
    perex_ref[...] = (jnp.maximum(z, 0.0) - z * t
                      + jnp.log1p(jnp.exp(-jnp.abs(z))))


@functools.partial(jax.jit, static_argnames=("block_b",))
def bow_forward(x, t, params, block_b=None):
    """Full BOW_model forward: returns (loss, logits) == (loss(h[:,0], t), h[:,0]).

    x: (B, 300) float32, t: (B,) float32 targets in {0, 1}.
    params: folded (bf16 w1, f32 b1, bf16 w2, f32 b2, f32 wo_row, f32 bo).
    """
    w1, b1, w2, b2, wo, bo = params
    B, F = x.shape

    # Batch tile: production default 256 rows; small batches use one 8-aligned
    # block (per-grid-step overhead would dominate otherwise).
    if block_b is None:
        block_b = 256 if B >= 256 else max(8, ((B + 7) // 8) * 8)
    block_b = ((block_b + 7) // 8) * 8
    num_blocks = pl.cdiv(B, block_b)
    b_pad = num_blocks * block_b

    xb = x.astype(jnp.bfloat16)                       # halve x DMA volume
    tb = t.reshape(B, 1).astype(jnp.float32)
    if b_pad != B:
        xb = jnp.pad(xb, ((0, b_pad - B), (0, 0)))
        tb = jnp.pad(tb, ((0, b_pad - B), (0, 0)))

    tiled = lambda shape: pl.BlockSpec(shape, lambda i: (i, 0))      # per-block
    resident = lambda shape: pl.BlockSpec(shape, lambda i: (0, 0))   # weights

    logits, per_ex = pl.pallas_call(
        _bow_kernel,
        grid=(num_blocks,),
        out_shape=(
            jax.ShapeDtypeStruct((b_pad, 1), jnp.float32),   # logits
            jax.ShapeDtypeStruct((b_pad, 1), jnp.float32),   # per-example BCE
        ),
        in_specs=[
            tiled((block_b, F)),        # x
            tiled((block_b, 1)),        # t
            resident(w1.shape), resident(b1.shape),
            resident(w2.shape), resident(b2.shape),
            resident(wo.shape), resident(bo.shape),
        ],
        out_specs=(tiled((block_b, 1)), tiled((block_b, 1))),
        compiler_params=pltpu.CompilerParams(
            dimension_semantics=("parallel",)),
    )(xb, tb, w1, b1, w2, b2, wo, bo)

    loss = jnp.sum(per_ex[:B, 0]) / B
    return loss, logits[:B, 0]


def init_params(key, no_of_hidden_units, in_features=IN_FEATURES):
    """Raw (PyTorch-equivalent) parameters: Linear uniform(+-1/sqrt(fan_in)),
    BatchNorm1d defaults (gamma=1, beta=0, running_mean=0, running_var=1)."""
    H = no_of_hidden_units
    k1, k2, k3, k4, k5, k6 = jax.random.split(key, 6)

    def linear(kw, kb, fan_in, fan_out):
        bound = 1.0 / jnp.sqrt(float(fan_in))
        w = jax.random.uniform(kw, (fan_in, fan_out), jnp.float32, -bound, bound)
        b = jax.random.uniform(kb, (1, fan_out), jnp.float32, -bound, bound)
        return w, b

    w1, b1 = linear(k1, k2, in_features, H)           # fc_hidden1
    w2, b2 = linear(k3, k4, H, H)                     # fc_hidden2
    wo, bo = linear(k5, k6, H, 1)                     # fc_output

    def bn_defaults():
        return dict(gamma=jnp.ones((1, H), jnp.float32),
                    beta=jnp.zeros((1, H), jnp.float32),
                    mean=jnp.zeros((1, H), jnp.float32),
                    var=jnp.ones((1, H), jnp.float32),
                    eps=1e-5)

    return dict(w1=w1, b1=b1, bn1=bn_defaults(),
                w2=w2, b2=b2, bn2=bn_defaults(),
                wo=wo, bo=bo)


def fold_params(raw):
    """Fold eval-mode BatchNorm into the linear layers (exact) and cast the
    matmul weights to bf16 for the MXU; elementwise-path params stay f32."""
    def fold(w, b, bn):
        scale = bn["gamma"] / jnp.sqrt(bn["var"] + bn["eps"])    # (1, H)
        shift = bn["beta"] - bn["mean"] * scale                  # (1, H)
        return w * scale, b * scale + shift

    w1f, b1f = fold(raw["w1"], raw["b1"], raw["bn1"])
    w2f, b2f = fold(raw["w2"], raw["b2"], raw["bn2"])
    wo_row = raw["wo"].T                                          # (1, H)
    return (w1f.astype(jnp.bfloat16), b1f,
            w2f.astype(jnp.bfloat16), b2f,
            wo_row.astype(jnp.float32), raw["bo"])


def _reference_folded(x, t, params):
    """Pure-JAX reference mirroring the kernel numerics (folded BN, bf16 matmul)."""
    w1, b1, w2, b2, wo, bo = params
    h = jnp.dot(x.astype(jnp.bfloat16), w1, preferred_element_type=jnp.float32)
    h = jnp.maximum(h + b1, 0.0)
    h = jnp.dot(h.astype(jnp.bfloat16), w2, preferred_element_type=jnp.float32)
    h = jnp.maximum(h + b2, 0.0)
    z = jnp.sum(h * wo, axis=-1) + bo[0, 0]
    loss = jnp.mean(jnp.maximum(z, 0.0) - z * t + jnp.log1p(jnp.exp(-jnp.abs(z))))
    return loss, z


def _reference_f32(x, t, raw):
    """Pure-f32, unfused eval-mode reference of the original module."""
    def bn(h, p):
        return (h - p["mean"]) / jnp.sqrt(p["var"] + p["eps"]) * p["gamma"] + p["beta"]
    h = jnp.maximum(bn(x @ raw["w1"] + raw["b1"], raw["bn1"]), 0.0)
    h = jnp.maximum(bn(h @ raw["w2"] + raw["b2"], raw["bn2"]), 0.0)
    z = (h @ raw["wo"] + raw["bo"])[:, 0]
    loss = jnp.mean(jnp.maximum(z, 0.0) - z * t + jnp.log1p(jnp.exp(-jnp.abs(z))))
    return loss, z


if __name__ == "__main__":
    key = jax.random.PRNGKey(0)
    k_param, k_x, k_t = jax.random.split(key, 3)

    B = 16     # batch
    H = 32     # no_of_hidden_units
    IN = IN_FEATURES

    raw = init_params(k_param, H, IN)
    params = fold_params(raw)

    x = jax.random.normal(k_x, (B, IN), jnp.float32)
    t = jax.random.bernoulli(k_t, 0.5, (B,)).astype(jnp.float32)

    # block_b=8 -> grid=(2,): exercises the batch-tiled, pipelined path.
    loss, logits = bow_forward(x, t, params, block_b=8)
    loss, logits = jax.block_until_ready((loss, logits))

    # Tight check against a reference that mirrors the kernel numerics.
    ref_loss, ref_logits = _reference_folded(x, t, params)
    assert jnp.allclose(loss, ref_loss, atol=5e-3, rtol=1e-3), (loss, ref_loss)
    assert jnp.allclose(logits, ref_logits, atol=5e-3, rtol=1e-3)

    # Looser check against the original f32 eval-mode module semantics.
    f32_loss, f32_logits = _reference_f32(x, t, raw)
    assert jnp.allclose(loss, f32_loss, atol=5e-2, rtol=5e-2), (loss, f32_loss)
    assert jnp.allclose(logits, f32_logits, atol=5e-2, rtol=5e-2)

    print("KERNEL_OK")
</pallas_src>

<mosaic_0001>
module attributes {stable_mosaic.version = 11 : i64} {
  func.func @_bow_kernel(%arg0: i32, %arg1: memref<8x300xbf16, #tpu.memory_space<vmem>>, %arg2: memref<8x1xf32, #tpu.memory_space<vmem>>, %arg3: memref<300x32xbf16, #tpu.memory_space<vmem>>, %arg4: memref<1x32xf32, #tpu.memory_space<vmem>>, %arg5: memref<32x32xbf16, #tpu.memory_space<vmem>>, %arg6: memref<1x32xf32, #tpu.memory_space<vmem>>, %arg7: memref<1x32xf32, #tpu.memory_space<vmem>>, %arg8: memref<1x1xf32, #tpu.memory_space<vmem>>, %arg9: memref<8x1xf32, #tpu.memory_space<vmem>>, %arg10: memref<8x1xf32, #tpu.memory_space<vmem>>) attributes {dimension_semantics = [#tpu.dimension_semantics<parallel>], iteration_bounds = array<i64: 2>, scalar_prefetch = 0 : i64, scratch_operands = 0 : i64, tpu.core_type = #tpu.core_type<tc>, window_params = [{transform_indices = @transform_0, window_bounds = array<i64: 8, 300>}, {transform_indices = @transform_1, window_bounds = array<i64: 8, 1>}, {pipeline_mode = #tpu.pipeline_mode<synchronous>, transform_indices = @transform_2, window_bounds = array<i64: 300, 32>}, {pipeline_mode = #tpu.pipeline_mode<synchronous>, transform_indices = @transform_3, window_bounds = array<i64: 1, 32>}, {pipeline_mode = #tpu.pipeline_mode<synchronous>, transform_indices = @transform_4, window_bounds = array<i64: 32, 32>}, {pipeline_mode = #tpu.pipeline_mode<synchronous>, transform_indices = @transform_5, window_bounds = array<i64: 1, 32>}, {pipeline_mode = #tpu.pipeline_mode<synchronous>, transform_indices = @transform_6, window_bounds = array<i64: 1, 32>}, {pipeline_mode = #tpu.pipeline_mode<synchronous>, transform_indices = @transform_7, window_bounds = array<i64: 1, 1>}, {transform_indices = @transform_8, window_bounds = array<i64: 8, 1>}, {transform_indices = @transform_9, window_bounds = array<i64: 8, 1>}]} {
    %c0 = arith.constant 0 : index
    %c0_0 = arith.constant 0 : index
    %0 = vector.load %arg1[%c0, %c0_0] : memref<8x300xbf16, #tpu.memory_space<vmem>>, vector<8x300xbf16>
    %c0_1 = arith.constant 0 : index
    %c0_2 = arith.constant 0 : index
    %1 = vector.load %arg3[%c0_1, %c0_2] : memref<300x32xbf16, #tpu.memory_space<vmem>>, vector<300x32xbf16>
    %cst = arith.constant dense<0.000000e+00> : vector<8x32xf32>
    %2 = tpu.matmul %0, %1, %cst {dimension_numbers = #tpu.dot_dimension_numbers<[1], [0], [0], [1], [0, 0, 1, 1], [], []>} : vector<8x300xbf16>, vector<300x32xbf16>, vector<8x32xf32> -> vector<8x32xf32>
    %c0_3 = arith.constant 0 : index
    %c0_4 = arith.constant 0 : index
    %3 = vector.load %arg4[%c0_3, %c0_4] : memref<1x32xf32, #tpu.memory_space<vmem>>, vector<1x32xf32>
    %4 = vector.broadcast %3 : vector<1x32xf32> to vector<8x32xf32>
    %5 = arith.addf %2, %4 : vector<8x32xf32>
    %cst_5 = arith.constant 0.000000e+00 : f32
    %6 = vector.broadcast %cst_5 : f32 to vector<8x32xf32>
    %7 = arith.maximumf %5, %6 : vector<8x32xf32>
    %8 = arith.truncf %7 : vector<8x32xf32> to vector<8x32xbf16>
    %c0_6 = arith.constant 0 : index
    %c0_7 = arith.constant 0 : index
    %9 = vector.load %arg5[%c0_6, %c0_7] : memref<32x32xbf16, #tpu.memory_space<vmem>>, vector<32x32xbf16>
    %cst_8 = arith.constant dense<0.000000e+00> : vector<8x32xf32>
    %10 = tpu.matmul %8, %9, %cst_8 {dimension_numbers = #tpu.dot_dimension_numbers<[1], [0], [0], [1], [0, 0, 1, 1], [], []>} : vector<8x32xbf16>, vector<32x32xbf16>, vector<8x32xf32> -> vector<8x32xf32>
    %c0_9 = arith.constant 0 : index
    %c0_10 = arith.constant 0 : index
    %11 = vector.load %arg6[%c0_9, %c0_10] : memref<1x32xf32, #tpu.memory_space<vmem>>, vector<1x32xf32>
    %12 = vector.broadcast %11 : vector<1x32xf32> to vector<8x32xf32>
    %13 = arith.addf %10, %12 : vector<8x32xf32>
    %cst_11 = arith.constant 0.000000e+00 : f32
    %14 = vector.broadcast %cst_11 : f32 to vector<8x32xf32>
    %15 = arith.maximumf %13, %14 : vector<8x32xf32>
    %c0_12 = arith.constant 0 : index
    %c0_13 = arith.constant 0 : index
    %16 = vector.load %arg7[%c0_12, %c0_13] : memref<1x32xf32, #tpu.memory_space<vmem>>, vector<1x32xf32>
    %17 = vector.broadcast %16 : vector<1x32xf32> to vector<8x32xf32>
    %18 = arith.mulf %15, %17 : vector<8x32xf32>
    %cst_14 = arith.constant dense<0.000000e+00> : vector<8xf32>
    %19 = vector.multi_reduction <add>, %18, %cst_14 [1] : vector<8x32xf32> to vector<8xf32>
    %20 = vector.shape_cast %19 : vector<8xf32> to vector<8x1xf32>
    %c0_15 = arith.constant 0 : index
    %c0_16 = arith.constant 0 : index
    %21 = vector.load %arg8[%c0_15, %c0_16] : memref<1x1xf32, #tpu.memory_space<vmem>>, vector<1x1xf32>
    %22 = vector.broadcast %21 : vector<1x1xf32> to vector<8x1xf32>
    %23 = arith.addf %20, %22 : vector<8x1xf32>
    %c0_17 = arith.constant 0 : index
    %c0_18 = arith.constant 0 : index
    %24 = vector.load %arg9[%c0_17, %c0_18] : memref<8x1xf32, #tpu.memory_space<vmem>>, vector<8x1xf32>
    tpu.vector_store %arg9[%c0_17, %c0_18], %23 {strides = array<i32>} : memref<8x1xf32, #tpu.memory_space<vmem>>, vector<8x1xf32>,
    %c0_19 = arith.constant 0 : index
    %c0_20 = arith.constant 0 : index
    %25 = vector.load %arg2[%c0_19, %c0_20] : memref<8x1xf32, #tpu.memory_space<vmem>>, vector<8x1xf32>
    %cst_21 = arith.constant 0.000000e+00 : f32
    %26 = vector.broadcast %cst_21 : f32 to vector<8x1xf32>
    %27 = arith.maximumf %23, %26 : vector<8x1xf32>
    %28 = arith.mulf %23, %25 : vector<8x1xf32>
    %29 = arith.subf %27, %28 : vector<8x1xf32>
    %30 = math.absf %23 : vector<8x1xf32>
    %cst_22 = arith.constant 0.000000e+00 : f32
    %31 = vector.broadcast %cst_22 : f32 to vector<8x1xf32>
    %32 = arith.subf %31, %30 : vector<8x1xf32>
    %33 = math.exp %32 : vector<8x1xf32>
    %34 = math.log1p %33 : vector<8x1xf32>
    %35 = arith.addf %29, %34 : vector<8x1xf32>
    %c0_23 = arith.constant 0 : index
    %c0_24 = arith.constant 0 : index
    %36 = vector.load %arg10[%c0_23, %c0_24] : memref<8x1xf32, #tpu.memory_space<vmem>>, vector<8x1xf32>
    tpu.vector_store %arg10[%c0_23, %c0_24], %35 {strides = array<i32>} : memref<8x1xf32, #tpu.memory_space<vmem>>, vector<8x1xf32>,
    return
  }
  func.func @transform_0(%arg0: i32) -> (i32, i32) {
    %c0_i32 = arith.constant 0 : i32
    %c0_i32_0 = arith.constant 0 : i32
    return %arg0, %c0_i32 : i32, i32
  }
  func.func @transform_1(%arg0: i32) -> (i32, i32) {
    %c0_i32 = arith.constant 0 : i32
    %c0_i32_0 = arith.constant 0 : i32
    return %arg0, %c0_i32 : i32, i32
  }
  func.func @transform_2(%arg0: i32) -> (i32, i32) {
    %c0_i32 = arith.constant 0 : i32
    %c0_i32_0 = arith.constant 0 : i32
    %c0_i32_1 = arith.constant 0 : i32
    return %c0_i32, %c0_i32_0 : i32, i32
  }
  func.func @transform_3(%arg0: i32) -> (i32, i32) {
    %c0_i32 = arith.constant 0 : i32
    %c0_i32_0 = arith.constant 0 : i32
    %c0_i32_1 = arith.constant 0 : i32
    return %c0_i32, %c0_i32_0 : i32, i32
  }
  func.func @transform_4(%arg0: i32) -> (i32, i32) {
    %c0_i32 = arith.constant 0 : i32
    %c0_i32_0 = arith.constant 0 : i32
    %c0_i32_1 = arith.constant 0 : i32
    return %c0_i32, %c0_i32_0 : i32, i32
  }
  func.func @transform_5(%arg0: i32) -> (i32, i32) {
    %c0_i32 = arith.constant 0 : i32
    %c0_i32_0 = arith.constant 0 : i32
    %c0_i32_1 = arith.constant 0 : i32
    return %c0_i32, %c0_i32_0 : i32, i32
  }
  func.func @transform_6(%arg0: i32) -> (i32, i32) {
    %c0_i32 = arith.constant 0 : i32
    %c0_i32_0 = arith.constant 0 : i32
    %c0_i32_1 = arith.constant 0 : i32
    return %c0_i32, %c0_i32_0 : i32, i32
  }
  func.func @transform_7(%arg0: i32) -> (i32, i32) {
    %c0_i32 = arith.constant 0 : i32
    %c0_i32_0 = arith.constant 0 : i32
    %c0_i32_1 = arith.constant 0 : i32
    return %c0_i32, %c0_i32_0 : i32, i32
  }
  func.func @transform_8(%arg0: i32) -> (i32, i32) {
    %c0_i32 = arith.constant 0 : i32
    %c0_i32_0 = arith.constant 0 : i32
    return %arg0, %c0_i32 : i32, i32
  }
  func.func @transform_9(%arg0: i32) -> (i32, i32) {
    %c0_i32 = arith.constant 0 : i32
    %c0_i32_0 = arith.constant 0 : i32
    return %arg0, %c0_i32 : i32, i32
  }
}

</mosaic_0001>

<bundles_post_ra>
// kernel: bow_forward.1
= control target key start
LH: loop header
LB: loop body
LE: loop exit
PB: predicated region body
PF: predicated region fallthrough
CT: control target
= control target key end

     0   :  { %s1016_s11 = smov 0   ;;  %s1124_s0 = inlined_call_operand.vmem [shape: bf16[16,300], index: 0, kind: input, shape index: {}]   ;;  %s1125_s1 = inlined_call_operand.vmem [shape: f32[16,1], index: 1, kind: input, shape index: {}]   ;;  %s1126_s2 = inlined_call_operand.vmem [shape: bf16[300,32], index: 2, kind: input, shape index: {}]   ;;  %s1127_s3 = inlined_call_operand.vmem [shape: f32[1,32], index: 3, kind: input, shape index: {}]   ;;  %s1128_s4 = inlined_call_operand.vmem [shape: bf16[32,32], index: 4, kind: input, shape index: {}]   ;;  %s1129_s5 = inlined_call_operand.vmem [shape: f32[1,32], index: 5, kind: input, shape index: {}]   ;;  %s1130_s6 = inlined_call_operand.vmem [shape: f32[1,32], index: 6, kind: input, shape index: {}]   ;;  %s1131_s7 = inlined_call_operand.<no memory space> [shape: f32[1,1], index: 7, kind: input, shape index: {}]   ;;  %s1132_s8 = inlined_call_operand.vmem [shape: f32[16,1], index: 8, kind: output, shape index: {0}]   ;;  %s1133_s9 = inlined_call_operand.vmem [shape: f32[16,1], index: 9, kind: output, shape index: {1}]  }
   0x1   :  { %v15_v0 = vstv %s1131_s7 }
   0x2   :  { %16 = vst [vmem:[#allocation2] sm:$0x1] %v15_v0 }
   0x3 LB: > { %s826_s12 = sadd.s32 4294967295, %s959_s11   ;;  %p830_p0 = scmp.ge.s32.totalorder %s959_s11, 1  ;;  %s959_s11 = sphi %s1016_s11, %s22_s11  }
   0x4   : > { %p301_p1 = scmp.lt.s32.totalorder %s959_s11, 3 }
   0x6   : > { %p302_p2 = pnand %p830_p0, %p301_p1 }
   0x7   : > { %p344_p3 = scmp.lt.s32.totalorder (!%p302_p2), %s826_s12, 1 }
   0x8   : > { %305 = sbr.rel (%p302_p2) target bundleno = 633 (0x279), region = 52 }
   0xd   : > { %v925_v1 = vld [vmem:[%s1126_s2 + $0x78] sm:$0xff]   ;;  %v961_v3 = vmov 0.0   ;;  %v927_v4 = vld [vmem:[%s1126_s2 + $0x70] sm:$0xff]   ;;  %v929_v6 = vld [vmem:[%s1126_s2 + $0x68] sm:$0xff]   ;;  %vm962_vm0 = vmmov 0   ;;  %s1135_s12 = smov (!%p344_p3, %s826_s12), 1 }
   0xe   : > { %v926_v2 = vld [vmem:[%s1126_s2 + $0x38] sm:$0xff]   ;;  %896 = vmatprep.subr.bf16.mxu1 %v961_v3  ;;  %867 = vmatprep.subr.bf16.mxu0 %v925_v1  ;;  %v928_v5 = vld [vmem:[%s1126_s2 + $0x30] sm:$0xff]   ;;  %v930_v7 = vld [vmem:[%s1126_s2 + $0x28] sm:$0xff]   ;;  %vm536_vm1 = vcmask 1045504   ;;  %s914_s30 = smul.u32 12, %s1135_s12  ;;  %vm532_vm2 = vcmask 359424  }
   0xf   : > { %868 = vmatpush3.bf16.msra.mxu0 %v926_v2  ;;  %902 = vmatprep.mubr.msk.bf16.mxu1 %vm962_vm0, %v961_v3  ;;  %v931_v8 = vld [vmem:[%s1126_s2 + $0x60] sm:$0xff]   ;;  %v933_v10 = vld [vmem:[%s1126_s2 + $0x58] sm:$0xff]   ;;  %v937_v11 = vld [vmem:[%s1126_s2 + $0x90] sm:$0x3f]   ;;  %vm645_vm3 = vcmask 261120   ;;  %s1105_s24 = sshll.u32 %s1135_s12, 3 }
  0x10   : > { %869 = vmatprep.subr.bf16.mxu0 %v927_v4  ;;  %v932_v9 = vld [vmem:[%s1126_s2 + $0x20] sm:$0xff]   ;;  %v934_v12 = vld [vmem:[%s1126_s2 + $0x18] sm:$0xff]   ;;  %v538_v13 = vsel %vm536_vm1, %v937_v11, 0  ;;  %v940_v14 = vld [vmem:[%s1126_s2 + $0x88] sm:$0xff]   ;;  %s348_s21 = scalar_lea.vmem %s1124_s0, %s914_s30  ;;  %s356_s27 = scalar_lea.vmem %s1132_s8, %s1105_s24  ;;  %vm709_vm4 = vcmask 7168  }
  0x11   : > { %897 = vmatpush3.bf16.msra.mxu1 %v538_v13  ;;  %v935_v15 = vld [vmem:[%s1126_s2 + $0x50] sm:$0xff]   ;;  %v943_v17 = vld [vmem:[%s1126_s2 + $0x80] sm:$0xff]   ;;  %v938_v19 = vld [vmem:[%s1126_s2 + $0x48] sm:$0xff]   ;;  %s352_s29 = scalar_lea.vmem %s1125_s1, %s1105_s24  ;;  %s360_s13 = scalar_lea.vmem %s1133_s9, %s1105_s24 }
  0x12   : > { %898 = vmatprep.subr.bf16.mxu1 %v961_v3  ;;  %v936_v16 = vld [vmem:[%s1126_s2 + $0x10] sm:$0xff]   ;;  %v362_v18 = vld [vmem:[%s348_s21] sm:$0xff]  ;;  %v946_v21 = vld [vmem:[%s348_s21 + $0x8] ss:$0 sps:$4 sm:$0xff]  }
  0x13   : > { %870 = vmatpush3.bf16.msra.mxu0 %v928_v5  ;;  %v837_v20 = vcombine.high %v362_v18, %v362_v18  ;;  %v939_v22 = vld [vmem:[%s1126_s2 + $0x8] sm:$0xff]   ;;  %v941_v23 = vld [vmem:[%s1126_s2 + $0x40] sm:$0xff]   ;;  %v836_v25 = vcombine.low %v362_v18, %v362_v18 }
  0x14   : > { %871 = vmatprep.subr.bf16.mxu0 %v929_v6  ;;  %v942_v24 = vld [vmem:[%s1126_s2] sm:$0xff]   ;;  %v947_v26 = vld [vmem:[%s1128_s4 + $0x8] sm:$0xff]  }
  0x15   : > { %899 = vmatpush3.bf16.msra.mxu1 %v940_v14  ;;  %572 = vmatprep.mubr.bf16.mxu0 %v837_v20  ;;  %v948_v27 = vld [vmem:[%s1128_s4] sm:$0xff]  }
  0x16   : > { %900 = vmatprep.subr.bf16.mxu1 %v961_v3  ;;  %v835_v33 = vld [vmem:[%s1127_s3] ss:$0 sm:$0xff] }
  0x17   : > { %872 = vmatpush3.bf16.msra.mxu0 %v930_v7  ;;  %v859_v42 = vld [vmem:[%s1129_s5] ss:$0 sm:$0xff] }
  0x18   : > { %873 = vmatprep.subr.bf16.mxu0 %v931_v8  ;;  %v863_v46 = vld [vmem:[%s1130_s6] ss:$0 sm:$0xff] }
  0x19   : > { %901 = vmatpush3.bf16.msra.mxu1 %v943_v17  ;;  %v864_v52 = vld [vmem:[#allocation2] ss:$0 sm:$0xff] }
  0x1a   : > { %906 = vmatprep.subr.bf16.mxu1 %v961_v3  ;;  %v711_v61 = vld [vmem:[%s352_s29] sm:$0xff] }
  0x1b   : > { %874 = vmatpush3.bf16.msra.mxu0 %v932_v9 }
  0x1c   : > { %875 = vmatprep.subr.bf16.mxu0 %v933_v10  ;;  %903 = vmatmul.mubr.msk.bf16.vlgmr.msra.gmra.mxu1 %vm532_vm2, %v946_v21 }
  0x1d   : > { %910 = vmatprep.mubr.msk.bf16.mxu1 %vm962_vm0, %v961_v3  ;;  %907 = vmatpush3.bf16.msra.mxu1 %v947_v26 }
  0x1e   : > { %908 = vmatprep.subr.bf16.mxu1 %v961_v3 }
  0x1f   : > { %876 = vmatpush3.bf16.msra.mxu0 %v934_v12 }
  0x20   : > { %877 = vmatprep.subr.bf16.mxu0 %v935_v15 }
  0x21   : > { %909 = vmatpush3.bf16.msra.mxu1 %v948_v27 }
  0x23   : > { %878 = vmatpush3.bf16.msra.mxu0 %v936_v16 }
  0x24   : > { %879 = vmatprep.subr.bf16.mxu0 %v938_v19 }
  0x27   : > { %880 = vmatpush3.bf16.msra.mxu0 %v939_v22 }
  0x28   : > { %881 = vmatprep.subr.bf16.mxu0 %v941_v23 }
  0x2b   : > { %882 = vmatpush3.bf16.msra.mxu0 %v942_v24 }
  0x2e   : > { %573 = vmatmul.mubr.bf16.vlgmr.msra.gmra.mxu0 %v836_v25 }
  0xdc   : > { %v614_v28 = vpop.f32.mrf.mxu1 }
  0xde   : > { %v904_v29 = vpop.f32.mrf.mxu1 }
  0xe0   : > { %v617_v30 = vpop.f32.mrf.mxu1 }
  0xe2   : > { %v905_v31 = vpop.f32.mrf.mxu1 }
  0xee   : > { %v883_v32 = vpop.f32.mrf.mxu0 }
  0xf0   : > { %v884_v34 = vpop.f32.mrf.mxu0 }
  0xf1   : > { %v885_v35 = vadd.f32 %v884_v34, %v883_v32 }
  0xf2   : > { %v886_v36 = vpop.f32.mrf.mxu0 }
  0xf3   : > { %v575_v37 = vadd.f32 %v885_v35, %v835_v33 }
  0xf4   : > { %v887_v38 = vpop.f32.mrf.mxu0 }
  0xf5   : > { %v615_v39 = vadd.f32 %v614_v28, %v575_v37 }
  0xf7   : > { %v620_v40 = vmax.f32 %v615_v39, 0.0 }
  0xf9   : > { %v621_v41 = vpack.c.bf16 %v620_v40, %v620_v40 }
  0xfb   : > { %911 = vmatmul.mubr.msk.bf16.vlgmr.msra.gmra.mxu1 %vm645_vm3, %v621_v41 }
 0x1bb   : > { %v683_v43 = vpop.f32.mrf.mxu1 }
 0x1bc   : > { %v684_v44 = vadd.f32 %v859_v42, %v683_v43 }
 0x1bd   : > { %v912_v45 = vpop.f32.mrf.mxu1 }
 0x1be   : > { %v689_v47 = vmax.f32 %v684_v44, 0.0 }
 0x1bf   : > { %v686_v48 = vpop.f32.mrf.mxu1 }
 0x1c0   : > { %v697_v49 = vmul.f32 %v863_v46, %v689_v47 }
 0x1c1   : > { %v913_v50 = vpop.f32.mrf.mxu1 }
 0x1c2   : > { %v698_v51 = vsel %vm645_vm3, %v697_v49, 0.0 }
 0x1c3   : > { %699 = vadd.xlane.f32.xlu0 %v698_v51 }
 0x24c   : > { %v700_v53 = vpop.xlane.xlu0 %699 }
 0x24d   : > { %v708_v54 = vadd.f32 %v864_v52, %v700_v53 }
 0x24f   : > { %710 = vst.msk [vmem:[%s356_s27] sm:$0xff] %vm709_vm4, %v708_v54  ;;  %v715_v55 = vand.u32 2147483647, %v708_v54  ;;  %v712_v63 = vmax.f32 %v708_v54, 0.0  ;;  %v713_v0 = vmul.f32 %v711_v61, %v708_v54 }
 0x251   : > { %v716_v56 = vsub.f32 0.0, %v715_v55  ;;  %v714_v5 = vsub.f32 %v712_v63, %v713_v0 }
 0x253   : > { %v717_v57 = vmul.f32 1.442695, %v716_v56 }
 0x255   : > { %949 = vpow2.f32 %v717_v57 }
 0x262   : > { %v950_v58 = vpop.eup %949 }
 0x263   : > { %v719_v59 = vadd.f32 1.0, %v950_v58  ;;  %v722_v60 = vmul.f32 -0.5, %v950_v58  ;;  %v725_v1 = vand.u32 2147483647, %v950_v58 }
 0x265   : > { %951 = vlog2.f32 %v719_v59  ;;  %v723_v62 = vadd.f32 1.0, %v722_v60  ;;  %vm726_vm5 = vcmp.lt.f32.partialorder %v725_v1, 0.0004427343 }
 0x267   : > { %v724_v4 = vmul.f32 %v950_v58, %v723_v62 }
 0x272   : > { %v952_v2 = vpop.eup %951 }
 0x273   : > { %v721_v3 = vmul.f32 0.6931472, %v952_v2 }
 0x275   : > { %v727_v6 = vsel %vm726_vm5, %v724_v4, %v721_v3 }
 0x276   : > { %v728_v7 = vadd.f32 %v727_v6, %v714_v5 }
 0x278   : > { %729 = vst.msk [vmem:[%s360_s13] sm:$0xff] %vm709_vm4, %v728_v7 }
 0x279 PF: > { %s22_s11 = sadd.s32 1, %s959_s11  }
 0x27a   : > { %p19_p4 = scmp.ge.s32.totalorder %s22_s11, 4  }
 0x27c   :  { %21 = sbr.rel (!%p19_p4) target bundleno = 3 (0x3), region = 97 }

</bundles_post_ra>
